<compile_context>
chip_gen: v5e
topology: v5e:2x2
jax: 0.10.0
libtpu: 0.0.40
codegen_flags: <defaults>
</compile_context>

<pallas_src>
import math

import jax
import jax.numpy as jnp
from jax.experimental import pallas as pl
from jax.experimental.pallas import tpu as pltpu


def _round_up(x, m):
    return ((x + m - 1) // m) * m


def _make_kernel(*, tm, tc, n_rows, n_classes, n_classes_padded):
    neg_big = -1e30  # finite "minus infinity" for padded classes
    has_class_pad = n_classes != n_classes_padded

    def kernel(emb_ref, w_ref, tgt_ref, out_ref, m_sc, l_sc, t_sc):
        i = pl.program_id(0)              # row-tile index   (parallel)
        j = pl.program_id(1)              # class-tile index (arbitrary / reduction)
        n_cls_tiles = pl.num_programs(1)

        @pl.when(j == 0)
        def _init():
            m_sc[...] = jnp.full_like(m_sc, -jnp.inf)
            l_sc[...] = jnp.zeros_like(l_sc)
            t_sc[...] = jnp.zeros_like(t_sc)

        # MXU matmul: bf16 inputs (1/temperature already folded into the weight
        # in the wrapper), f32 accumulation.  Logits arrive pre-scaled.
        logits = jnp.dot(emb_ref[...], w_ref[...],
                         preferred_element_type=jnp.float32)            # (tm, tc)

        cls_ids = j * tc + jax.lax.broadcasted_iota(jnp.int32, (tm, tc), 1)

        # Target logit: the matching class appears in exactly one class tile.
        tgt = tgt_ref[...]                                               # (tm, 1) int32
        t_sc[...] += jnp.sum(jnp.where(cls_ids == tgt, logits, 0.0),
                             axis=1, keepdims=True)

        # Class-axis padding can only exist when C % tc != 0; skip the
        # (tm,tc) compare+select entirely when there is none (trace-time).
        if has_class_pad:
            logits = jnp.where(cls_ids < n_classes, logits, neg_big)

        # Online (flash-style) logsumexp over the class tiles.
        m_new = jnp.maximum(m_sc[...], jnp.max(logits, axis=1, keepdims=True))
        alpha = jnp.exp(m_sc[...] - m_new)
        l_sc[...] = alpha * l_sc[...] + jnp.sum(jnp.exp(logits - m_new),
                                                axis=1, keepdims=True)
        m_sc[...] = m_new

        @pl.when(j == n_cls_tiles - 1)
        def _finalize():
            lse = m_sc[...] + jnp.log(l_sc[...])          # (tm, 1)
            per_row = lse - t_sc[...]                     # (tm, 1)
            # Mask zero-padded rows so they don't pollute the mean.
            row_ids = i * tm + jax.lax.broadcasted_iota(jnp.int32, (tm, 1), 0)
            per_row = jnp.where(row_ids < n_rows, per_row, 0.0)
            tile_sum = jnp.sum(per_row)
            # Lane-dense (1,1,128) store of this row tile's partial loss.
            out_ref[...] = jnp.broadcast_to(tile_sum, (1, 1, 128)).astype(jnp.float32)

    return kernel


def norm_softmax_loss(embeddings, instance_targets, weight, temperature=0.05,
                      *, tm=None, tc=None, matmul_dtype=jnp.bfloat16,
                      vmem_limit_bytes=32 * 1024 * 1024):
    """Forward pass of NormSoftmaxLoss. Returns a scalar float32 loss."""
    B, T, D = embeddings.shape
    C = weight.shape[0]
    N = B * T
    inv_temp = 1.0 / temperature

    # ---- tile selection --------------------------------------------------
    if tm is None:
        # Big row tiles: arithmetic intensity vs the streamed weight is ~tm
        # flop/byte (compute-bound needs ~640-700 on v6e, ~310 v7x, ~240 v5e),
        # and each grid step carries ~0.35 us of fixed overhead.
        tm = 1024 if D <= 1536 else 512
        tm = min(tm, _round_up(N, 8))
        # Keep >= 2 row tiles when there's enough work so the "parallel" row
        # axis can shard across v7x's two TensorCores (no-op for large N).
        if N > 8 and _round_up(N, tm) // tm < 2:
            tm = _round_up((N + 1) // 2, 8)
    assert tm % 8 == 0
    N_pad = _round_up(N, tm)

    # Class tile: lane-dense multiple of 128; the weight streams over this axis.
    c_pad128 = _round_up(C, 128)
    if tc is None:
        tc = min(512, c_pad128)
    assert tc % 128 == 0
    C_pad = _round_up(C, tc)

    # ---- one-time prep (hoisted out of the per-step kernel body) ----------
    # L2-normalize weight rows once (F.normalize, eps=1e-12), fold in
    # 1/temperature, transpose to (D, C), cast to MXU dtype, pad class axis.
    # (normalized weights are <= 1 in magnitude, so * inv_temp stays well
    #  inside bf16 range for any sane temperature)
    w32 = weight.astype(jnp.float32)
    norm = jnp.sqrt(jnp.sum(w32 * w32, axis=1, keepdims=True))
    w_n = (w32 / jnp.maximum(norm, 1e-12)) * inv_temp
    w_t = jnp.pad(w_n.T.astype(matmul_dtype), ((0, 0), (0, C_pad - C)))   # (D, C_pad)

    # Cast once (no f32 round-trip when inputs are already bf16), then pad.
    emb2 = jnp.pad(embeddings.reshape(N, D).astype(matmul_dtype),
                   ((0, N_pad - N), (0, 0)))                              # (N_pad, D)
    tgt2 = jnp.pad(instance_targets.reshape(N).astype(jnp.int32),
                   (0, N_pad - N)).reshape(N_pad, 1)                      # (N_pad, 1)

    n_row_tiles = N_pad // tm
    n_cls_tiles = C_pad // tc

    kernel = _make_kernel(tm=tm, tc=tc, n_rows=N, n_classes=C,
                          n_classes_padded=C_pad)

    partials = pl.pallas_call(
        kernel,
        out_shape=jax.ShapeDtypeStruct((n_row_tiles, 1, 128), jnp.float32),
        grid_spec=pltpu.PrefetchScalarGridSpec(
            num_scalar_prefetch=0,
            grid=(n_row_tiles, n_cls_tiles),
            in_specs=[
                pl.BlockSpec((tm, D), lambda i, j: (i, 0)),   # embedding rows (streamed)
                pl.BlockSpec((D, tc), lambda i, j: (0, j)),   # scaled normalized weight.T
                pl.BlockSpec((tm, 1), lambda i, j: (i, 0)),   # target ids
            ],
            out_specs=pl.BlockSpec((1, 1, 128), lambda i, j: (i, 0, 0)),
            # Three (tm,1) f32 accumulators (each lane-padded to 128 internally;
            # ~0.5 MiB apiece at tm=1024 - negligible vs the chosen tiles).
            scratch_shapes=[
                pltpu.VMEM((tm, 1), jnp.float32),   # running max
                pltpu.VMEM((tm, 1), jnp.float32),   # running sum-exp
                pltpu.VMEM((tm, 1), jnp.float32),   # target-logit accumulator
            ],
        ),
        compiler_params=pltpu.CompilerParams(
            dimension_semantics=("parallel", "arbitrary"),
            vmem_limit_bytes=vmem_limit_bytes,
        ),
    )(emb2, w_t, tgt2)

    # CrossEntropyLoss default reduction='mean' over all B*T positions.
    return jnp.sum(partials[:, 0, 0]) / N


def _reference_loss(embeddings, instance_targets, weight, temperature=0.05,
                    matmul_dtype=jnp.float32):
    """Pure-JAX reference mirroring the kernel's precision pipeline.

    matmul_dtype=bf16 reproduces the kernel path exactly (normalize f32,
    fold 1/temperature, cast to bf16, bf16 matmul with f32 accumulation);
    matmul_dtype=f32 is the 'PyTorch-like' full-precision reference.
    """
    w32 = weight.astype(jnp.float32)
    w_n = w32 / jnp.maximum(jnp.linalg.norm(w32, axis=1, keepdims=True), 1e-12)
    w_s = (w_n * (1.0 / temperature)).astype(matmul_dtype)
    logits = jnp.einsum(
        "btd,cd->btc",
        embeddings.astype(matmul_dtype),
        w_s,
        preferred_element_type=jnp.float32,
    )
    lse = jax.nn.logsumexp(logits, axis=-1)
    tgt_logit = jnp.take_along_axis(
        logits, instance_targets[..., None].astype(jnp.int32), axis=-1
    )[..., 0]
    return jnp.mean(lse - tgt_logit)


if __name__ == "__main__":
    temperature = 0.05
    key = jax.random.PRNGKey(0)

    # ---- test 1: small, module-consistent shapes --------------------------
    B, T, D, C = 2, 8, 32, 16
    k_w, k_e, k_t, key = jax.random.split(key, 4)
    stdv = 1.0 / math.sqrt(D)
    weight = jax.random.uniform(k_w, (C, D), jnp.float32, minval=-stdv, maxval=stdv)
    embeddings = jax.random.normal(k_e, (B, T, D), jnp.float32)
    instance_targets = jax.random.randint(k_t, (B, T), 0, C, jnp.int32)

    loss = norm_softmax_loss(embeddings, instance_targets, weight, temperature)
    loss = jax.block_until_ready(loss)

    ref_bf16 = _reference_loss(embeddings, instance_targets, weight, temperature,
                               matmul_dtype=jnp.bfloat16)
    assert jnp.allclose(loss, ref_bf16, rtol=1e-4, atol=1e-4), (loss, ref_bf16)
    ref_f32 = _reference_loss(embeddings, instance_targets, weight, temperature)
    assert jnp.allclose(loss, ref_f32, rtol=5e-2, atol=5e-1), (loss, ref_f32)

    # ---- test 2: exercises multiple row tiles + multiple class tiles -------
    # (online logsumexp across class tiles, no class padding -> mask skipped)
    B2, T2, D2, C2 = 2, 24, 48, 384
    k_w, k_e, k_t, key = jax.random.split(key, 4)
    stdv2 = 1.0 / math.sqrt(D2)
    weight2 = jax.random.uniform(k_w, (C2, D2), jnp.float32, minval=-stdv2, maxval=stdv2)
    embeddings2 = jax.random.normal(k_e, (B2, T2, D2), jnp.float32)
    targets2 = jax.random.randint(k_t, (B2, T2), 0, C2, jnp.int32)

    loss2 = norm_softmax_loss(embeddings2, targets2, weight2, temperature,
                              tm=16, tc=128)
    loss2 = jax.block_until_ready(loss2)
    ref2_bf16 = _reference_loss(embeddings2, targets2, weight2, temperature,
                                matmul_dtype=jnp.bfloat16)
    assert jnp.allclose(loss2, ref2_bf16, rtol=1e-4, atol=1e-3), (loss2, ref2_bf16)
    ref2_f32 = _reference_loss(embeddings2, targets2, weight2, temperature)
    assert jnp.allclose(loss2, ref2_f32, rtol=5e-2, atol=5e-1), (loss2, ref2_f32)

    print("KERNEL_OK")
</pallas_src>

<mosaic_0001>
module attributes {stable_mosaic.version = 11 : i64} {
  func.func @kernel(%arg0: i32, %arg1: i32, %arg2: memref<8x32xbf16, #tpu.memory_space<vmem>>, %arg3: memref<32x128xbf16, #tpu.memory_space<vmem>>, %arg4: memref<8x1xi32, #tpu.memory_space<vmem>>, %arg5: memref<1x1x128xf32, #tpu.memory_space<vmem>>, %arg6: memref<8x1xf32, #tpu.memory_space<vmem>>, %arg7: memref<8x1xf32, #tpu.memory_space<vmem>>, %arg8: memref<8x1xf32, #tpu.memory_space<vmem>>) attributes {dimension_semantics = [#tpu.dimension_semantics<parallel>, #tpu.dimension_semantics<arbitrary>], iteration_bounds = array<i64: 2, 1>, scalar_prefetch = 0 : i64, scratch_operands = 3 : i64, tpu.core_type = #tpu.core_type<tc>, window_params = [{transform_indices = @transform_0, window_bounds = array<i64: 8, 32>}, {transform_indices = @transform_1, window_bounds = array<i64: 32, 128>}, {transform_indices = @transform_2, window_bounds = array<i64: 8, 1>}, {transform_indices = @transform_3, window_bounds = array<i64: 1, 1, 128>}]} {
    %c0_i32 = arith.constant 0 : i32
    %0 = arith.cmpi eq, %arg1, %c0_i32 : i32
    %1 = arith.extui %0 : i1 to i32
    %c0_i32_0 = arith.constant 0 : i32
    %2 = arith.cmpi ne, %1, %c0_i32_0 : i32
    scf.if %2 {
      %cst_27 = arith.constant 0xFF800000 : f32
      %44 = vector.broadcast %cst_27 : f32 to vector<8x1xf32>
      %c0_28 = arith.constant 0 : index
      %c0_29 = arith.constant 0 : index
      %45 = vector.load %arg6[%c0_28, %c0_29] : memref<8x1xf32, #tpu.memory_space<vmem>>, vector<8x1xf32>
      tpu.vector_store %arg6[%c0_28, %c0_29], %44 {strides = array<i32>} : memref<8x1xf32, #tpu.memory_space<vmem>>, vector<8x1xf32>,
      %cst_30 = arith.constant 0.000000e+00 : f32
      %46 = vector.broadcast %cst_30 : f32 to vector<8x1xf32>
      %c0_31 = arith.constant 0 : index
      %c0_32 = arith.constant 0 : index
      %47 = vector.load %arg7[%c0_31, %c0_32] : memref<8x1xf32, #tpu.memory_space<vmem>>, vector<8x1xf32>
      tpu.vector_store %arg7[%c0_31, %c0_32], %46 {strides = array<i32>} : memref<8x1xf32, #tpu.memory_space<vmem>>, vector<8x1xf32>,
      %cst_33 = arith.constant 0.000000e+00 : f32
      %48 = vector.broadcast %cst_33 : f32 to vector<8x1xf32>
      %c0_34 = arith.constant 0 : index
      %c0_35 = arith.constant 0 : index
      %49 = vector.load %arg8[%c0_34, %c0_35] : memref<8x1xf32, #tpu.memory_space<vmem>>, vector<8x1xf32>
      tpu.vector_store %arg8[%c0_34, %c0_35], %48 {strides = array<i32>} : memref<8x1xf32, #tpu.memory_space<vmem>>, vector<8x1xf32>,
    } else {
    }
    %c0 = arith.constant 0 : index
    %c0_1 = arith.constant 0 : index
    %3 = vector.load %arg2[%c0, %c0_1] : memref<8x32xbf16, #tpu.memory_space<vmem>>, vector<8x32xbf16>
    %c0_2 = arith.constant 0 : index
    %c0_3 = arith.constant 0 : index
    %4 = vector.load %arg3[%c0_2, %c0_3] : memref<32x128xbf16, #tpu.memory_space<vmem>>, vector<32x128xbf16>
    %cst = arith.constant dense<0.000000e+00> : vector<8x128xf32>
    %5 = tpu.matmul %3, %4, %cst {dimension_numbers = #tpu.dot_dimension_numbers<[1], [0], [0], [1], [0, 0, 1, 1], [], []>} : vector<8x32xbf16>, vector<32x128xbf16>, vector<8x128xf32> -> vector<8x128xf32>
    %c128_i32 = arith.constant 128 : i32
    %6 = arith.muli %arg1, %c128_i32 : i32
    %7 = tpu.iota {dimensions = array<i32: 1>} : vector<8x128xi32>
    %8 = vector.broadcast %6 : i32 to vector<8x128xi32>
    %9 = arith.addi %8, %7 : vector<8x128xi32>
    %c0_4 = arith.constant 0 : index
    %c0_5 = arith.constant 0 : index
    %10 = vector.load %arg4[%c0_4, %c0_5] : memref<8x1xi32, #tpu.memory_space<vmem>>, vector<8x1xi32>
    %c0_6 = arith.constant 0 : index
    %c0_7 = arith.constant 0 : index
    %11 = vector.load %arg8[%c0_6, %c0_7] : memref<8x1xf32, #tpu.memory_space<vmem>>, vector<8x1xf32>
    %12 = vector.broadcast %10 : vector<8x1xi32> to vector<8x128xi32>
    %13 = arith.cmpi eq, %9, %12 : vector<8x128xi32>
    %cst_8 = arith.constant 0.000000e+00 : f32
    %14 = vector.broadcast %cst_8 : f32 to vector<8x128xf32>
    %15 = arith.select %13, %5, %14 : vector<8x128xi1>, vector<8x128xf32>
    %cst_9 = arith.constant dense<0.000000e+00> : vector<8xf32>
    %16 = vector.multi_reduction <add>, %15, %cst_9 [1] : vector<8x128xf32> to vector<8xf32>
    %17 = vector.shape_cast %16 : vector<8xf32> to vector<8x1xf32>
    %18 = arith.addf %11, %17 : vector<8x1xf32>
    %c0_10 = arith.constant 0 : index
    %c0_11 = arith.constant 0 : index
    %19 = vector.load %arg8[%c0_10, %c0_11] : memref<8x1xf32, #tpu.memory_space<vmem>>, vector<8x1xf32>
    tpu.vector_store %arg8[%c0_10, %c0_11], %18 {strides = array<i32>} : memref<8x1xf32, #tpu.memory_space<vmem>>, vector<8x1xf32>,
    %c16_i32 = arith.constant 16 : i32
    %20 = vector.broadcast %c16_i32 : i32 to vector<8x128xi32>
    %21 = arith.cmpi slt, %9, %20 : vector<8x128xi32>
    %cst_12 = arith.constant -1.000000e+30 : f32
    %22 = vector.broadcast %cst_12 : f32 to vector<8x128xf32>
    %23 = arith.select %21, %5, %22 : vector<8x128xi1>, vector<8x128xf32>
    %c0_13 = arith.constant 0 : index
    %c0_14 = arith.constant 0 : index
    %24 = vector.load %arg6[%c0_13, %c0_14] : memref<8x1xf32, #tpu.memory_space<vmem>>, vector<8x1xf32>
    %cst_15 = arith.constant dense<0xFF800000> : vector<8xf32>
    %25 = vector.multi_reduction <maximumf>, %23, %cst_15 [1] : vector<8x128xf32> to vector<8xf32>
    %26 = vector.shape_cast %25 : vector<8xf32> to vector<8x1xf32>
    %27 = arith.maximumf %24, %26 : vector<8x1xf32>
    %c0_16 = arith.constant 0 : index
    %c0_17 = arith.constant 0 : index
    %28 = vector.load %arg6[%c0_16, %c0_17] : memref<8x1xf32, #tpu.memory_space<vmem>>, vector<8x1xf32>
    %29 = arith.subf %28, %27 : vector<8x1xf32>
    %30 = math.exp %29 : vector<8x1xf32>
    %c0_18 = arith.constant 0 : index
    %c0_19 = arith.constant 0 : index
    %31 = vector.load %arg7[%c0_18, %c0_19] : memref<8x1xf32, #tpu.memory_space<vmem>>, vector<8x1xf32>
    %32 = arith.mulf %30, %31 : vector<8x1xf32>
    %33 = vector.broadcast %27 : vector<8x1xf32> to vector<8x128xf32>
    %34 = arith.subf %23, %33 : vector<8x128xf32>
    %35 = math.exp %34 : vector<8x128xf32>
    %cst_20 = arith.constant dense<0.000000e+00> : vector<8xf32>
    %36 = vector.multi_reduction <add>, %35, %cst_20 [1] : vector<8x128xf32> to vector<8xf32>
    %37 = vector.shape_cast %36 : vector<8xf32> to vector<8x1xf32>
    %38 = arith.addf %32, %37 : vector<8x1xf32>
    %c0_21 = arith.constant 0 : index
    %c0_22 = arith.constant 0 : index
    %39 = vector.load %arg7[%c0_21, %c0_22] : memref<8x1xf32, #tpu.memory_space<vmem>>, vector<8x1xf32>
    tpu.vector_store %arg7[%c0_21, %c0_22], %38 {strides = array<i32>} : memref<8x1xf32, #tpu.memory_space<vmem>>, vector<8x1xf32>,
    %c0_23 = arith.constant 0 : index
    %c0_24 = arith.constant 0 : index
    %40 = vector.load %arg6[%c0_23, %c0_24] : memref<8x1xf32, #tpu.memory_space<vmem>>, vector<8x1xf32>
    tpu.vector_store %arg6[%c0_23, %c0_24], %27 {strides = array<i32>} : memref<8x1xf32, #tpu.memory_space<vmem>>, vector<8x1xf32>,
    %c0_i32_25 = arith.constant 0 : i32
    %41 = arith.cmpi eq, %arg1, %c0_i32_25 : i32
    %42 = arith.extui %41 : i1 to i32
    %c0_i32_26 = arith.constant 0 : i32
    %43 = arith.cmpi ne, %42, %c0_i32_26 : i32
    scf.if %43 {
      %c0_27 = arith.constant 0 : index
      %c0_28 = arith.constant 0 : index
      %44 = vector.load %arg6[%c0_27, %c0_28] : memref<8x1xf32, #tpu.memory_space<vmem>>, vector<8x1xf32>
      %c0_29 = arith.constant 0 : index
      %c0_30 = arith.constant 0 : index
      %45 = vector.load %arg7[%c0_29, %c0_30] : memref<8x1xf32, #tpu.memory_space<vmem>>, vector<8x1xf32>
      %46 = math.log %45 : vector<8x1xf32>
      %47 = arith.addf %44, %46 : vector<8x1xf32>
      %c0_31 = arith.constant 0 : index
      %c0_32 = arith.constant 0 : index
      %48 = vector.load %arg8[%c0_31, %c0_32] : memref<8x1xf32, #tpu.memory_space<vmem>>, vector<8x1xf32>
      %49 = arith.subf %47, %48 : vector<8x1xf32>
      %c8_i32 = arith.constant 8 : i32
      %50 = arith.muli %arg0, %c8_i32 : i32
      %51 = tpu.iota {dimensions = array<i32: 0>} : vector<8x1xi32>
      %52 = vector.broadcast %50 : i32 to vector<8x1xi32>
      %53 = arith.addi %52, %51 : vector<8x1xi32>
      %c16_i32_33 = arith.constant 16 : i32
      %54 = vector.broadcast %c16_i32_33 : i32 to vector<8x1xi32>
      %55 = arith.cmpi slt, %53, %54 : vector<8x1xi32>
      %cst_34 = arith.constant 0.000000e+00 : f32
      %56 = vector.broadcast %cst_34 : f32 to vector<8x1xf32>
      %57 = arith.select %55, %49, %56 : vector<8x1xi1>, vector<8x1xf32>
      %58 = vector.shape_cast %57 : vector<8x1xf32> to vector<1x8x1xf32>
      %cst_35 = arith.constant dense<0.000000e+00> : vector<1xf32>
      %59 = vector.multi_reduction <add>, %58, %cst_35 [1, 2] : vector<1x8x1xf32> to vector<1xf32>
      %60 = vector.shape_cast %59 : vector<1xf32> to vector<1x1x1xf32>
      %61 = vector.extract %60[0, 0, 0] : f32 from vector<1x1x1xf32>
      %62 = vector.broadcast %61 : f32 to vector<1x1x128xf32>
      %c0_36 = arith.constant 0 : index
      %c0_37 = arith.constant 0 : index
      %c0_38 = arith.constant 0 : index
      %63 = vector.load %arg5[%c0_36, %c0_37, %c0_38] : memref<1x1x128xf32, #tpu.memory_space<vmem>>, vector<1x1x128xf32>
      tpu.vector_store %arg5[%c0_36, %c0_37, %c0_38], %62 {strides = array<i32>} : memref<1x1x128xf32, #tpu.memory_space<vmem>>, vector<1x1x128xf32>,
    } else {
    }
    return
  }
  func.func @transform_0(%arg0: i32, %arg1: i32) -> (i32, i32) {
    %c0_i32 = arith.constant 0 : i32
    %c0_i32_0 = arith.constant 0 : i32
    return %arg0, %c0_i32 : i32, i32
  }
  func.func @transform_1(%arg0: i32, %arg1: i32) -> (i32, i32) {
    %c0_i32 = arith.constant 0 : i32
    %c0_i32_0 = arith.constant 0 : i32
    return %c0_i32, %arg1 : i32, i32
  }
  func.func @transform_2(%arg0: i32, %arg1: i32) -> (i32, i32) {
    %c0_i32 = arith.constant 0 : i32
    %c0_i32_0 = arith.constant 0 : i32
    return %arg0, %c0_i32 : i32, i32
  }
  func.func @transform_3(%arg0: i32, %arg1: i32) -> (i32, i32, i32) {
    %c0_i32 = arith.constant 0 : i32
    %c0_i32_0 = arith.constant 0 : i32
    %c0_i32_1 = arith.constant 0 : i32
    return %arg0, %c0_i32, %c0_i32_0 : i32, i32, i32
  }
}

</mosaic_0001>

<bundles_post_ra>
// kernel: tpu_custom_call.1
= control target key start
LH: loop header
LB: loop body
LE: loop exit
PB: predicated region body
PF: predicated region fallthrough
CT: control target
= control target key end

     0   :  { %8 = vsyncpa [#allocation6], 0  ;;  %s836_s0 = inlined_call_operand.hbm [shape: bf16[16,32], index: 0, kind: input, shape index: {}]   ;;  %s837_s1 = inlined_call_operand.vmem [shape: bf16[32,128], index: 1, kind: input, shape index: {}]   ;;  %s838_s2 = inlined_call_operand.vmem [shape: s32[16,1], index: 2, kind: input, shape index: {}]   ;;  %s839_s3 = inlined_call_operand.hbm [shape: f32[2,1,128], index: 3, kind: output, shape index: {}]  }
   0x1   :  { %10 = vsyncpa [#allocation6 + $0x1], 0 }
   0x2   :  { %11 = vsyncpa [#allocation7], 0 }
   0x3   :  { %13 = vsyncpa [#allocation7 + $0x1], 0  ;;  %s696_s12 = smov 0   ;;  %s698_s13 = smov 0  }
   0x4   :  { %s700_s14 = smov 0   ;;  %s702_s15 = smov 0  }
   0x5   :  { %s704_s16 = smov 0   ;;  %s706_s17 = smov 0  }
   0x6 LB: > { %s460_s18 = sadd.s32 4294967295, %s671_s17   ;;  %s461_s19 = sadd.s32 4294967294, %s671_s17   ;;  %s671_s17 = sphi %s706_s17, %s19_s17   ;;  %s667_s16 = sphi %s704_s16, %s848_s16   ;;  %s663_s15 = sphi %s702_s15, %s847_s15   ;;  %s659_s14 = sphi %s700_s14, %s846_s14   ;;  %s655_s13 = sphi %s698_s13, %s845_s13   ;;  %s651_s12 = sphi %s696_s12, %s844_s12  }
   0x7   : > { %s31_s20 = sadd.s32 1, %s667_s16  ;;  %s38_s21 = sadd.s32 1, %s659_s14 }
   0x8   : > { %p33_p0 = scmp.ge.s32.totalorder %s31_s20, 2  ;;  %p45_p1 = scmp.ne.s32.totalorder %s659_s14, %s655_s13 }
   0x9   : > { %p46_p2 = scmp.eq.s32.totalorder %s671_s17, 0  ;;  %p51_p3 = scmp.ne.s32.totalorder %s655_s13, %s651_s12 }
   0xa   : > { %s850_s20 = smov (%p33_p0, %s31_s20), 0  ;;  %p52_p5 = scmp.eq.s32.totalorder %s460_s18, 0 }
   0xb   : > { %p737_p4 = por %p46_p2, %p45_p1  ;;  %s35_s23 = ssub.s32 %s667_s16, %s850_s20 }
   0xc   : > { %p127_p6 = scmp.eq.s32.totalorder %s460_s18, 1  ;;  %p36_p7 = scmp.eq.s32.totalorder %s35_s23, 0 }
   0xd   : > { %p743_p8 = por %p52_p5, %p51_p3  ;;  %p133_p10 = scmp.eq.s32.totalorder %s461_s19, 1 }
   0xe   : > { %p747_p9 = por %p127_p6, %p45_p1  ;;  %p464_p12 = scmp.ge.s32.totalorder %s671_s17, 2 }
   0xf   : > { %s752_s26 = scalar_select %p36_p7, %s659_s14, %s38_s21  }
  0x10   : > { %p754_p11 = por %p133_p10, %p51_p3  ;;  %p498_p13 = scmp.lt.s32.totalorder %s671_s17, 2 }
  0x11   : > { %s160_s28 = sand.u32 1, %s659_s14   ;;  %s466_s30 = sshll.u32 %s667_s16, 2 }
  0x12   : > { %s465_s29 = sshll.u32 %s160_s28, 2  ;;  %s168_s6 = scalar_lea.hbm %s836_s0, %s466_s30 }
  0x13   : > { %s164_s7 = scalar_lea.vmem [#allocation5], %s465_s29  ;;  %s170_s9 = sshll.u32 %s168_s6, 4  ;;  %s171_s9 = int_to_ptr.hbm [resolvable:$true] %s170_s9 }
  0x14   : > { %s172_s8 = sshll.u32 %s164_s7, 4  ;;  %p491_p0 = pnand %p498_p13, %p737_p4  ;;  %s173_s8 = int_to_ptr.vmem [resolvable:$true] %s172_s8 }
  0x15   : > { %p467_p1 = scmp.ge.s32.totalorder %s671_s17, 1  ;;  %p184_p2 = scmp.lt.s32.totalorder %s671_s17, 3 }
  0x16   : > { %s161_s10 = scalar_lea.sflag [#allocation6], %s160_s28 }
  0x17   : > { %493 = dma.hbm_to_vmem [thread:$0]  (!%p491_p0), %s171_s9, 64, %s173_s8, %s161_s10  }
  0x18   : > { %p185_p3 = pnand %p467_p1, %p184_p2 }
  0x19   : > { %s770_s11 = sand.u32 (!%p185_p3), 1, %s655_s13  }
  0x1a   : > { %188 = sbr.rel (%p185_p3) target bundleno = 735 (0x2df), region = 32  ;;  %s468_s18 = sshll.u32 (!%p185_p3), %s770_s11, 2 }
  0x1b   : > { %s191_s19 = scalar_lea.sflag (!%p185_p3), [#allocation6], %s770_s11  ;;  %s194_s21 = scalar_lea.vmem (!%p185_p3), [#allocation5], %s468_s18 }
  0x1f   : > { %642 = dma.done.wait (%p743_p8), %s191_s19, 64  }
  0x20   : > { %644 = vsyncadd (%p743_p8), %s191_s19, 4294967232  ;;  %p229_p4 = scmp.lt.s32.totalorder %s663_s15, 1  ;;  %v673_v0 = vmov 0   ;;  %v483_v1 = vld [vmem:[%s837_s1 + $0x8] sm:$0xff]  ;;  %v482_v3 = vld [vmem:[%s837_s1] sm:$0xff]  ;;  %vm259_vm0 = vcmask 261120   ;;  %v277_v6 = vlaneseq  ;;  %s355_s10 = scalar_lea.hbm %s839_s3, %s663_s15 }
  0x21   : > { %552 = vset.pattern.permute.xlu1 %v673_v0  ;;  %551 = vset.pattern.permute.xlu0 %v673_v0  ;;  %v242_v4 = vld [vmem:[%s194_s21] sm:$0xf]  ;;  %vm238_vm1 = vcmask 7168   ;;  %v674_v5 = vmov -inf   ;;  %v675_v13 = vmov 0.0   ;;  %s479_s7 = sshll.u32 %s663_s15, 3 }
  0x22   : > { %s230_s22 = scalar_select %p229_p4, %s663_s15, 1  ;;  %269 = vmatpush.bf16.msra.mxu0 %v483_v1  ;;  %239 = vst.msk [vmem:[#allocation2] sm:$0xff] %vm238_vm1, %v674_v5  ;;  %v278_v7 = vand.u32 127, %v277_v6  ;;  %v329_v32 = vshrl.u32 %v277_v6, 7  ;;  %v330_v33 = vstv %s479_s7 }
  0x23   : > { %241 = vst.msk [vmem:[#allocation4] sm:$0xff] %vm238_vm1, %v675_v13  ;;  %s224_s18 = scalar_lea.vmem [#allocation8], %s770_s11  ;;  %s359_s21 = sshll.u32 %s355_s10, 4  ;;  %s360_s21 = int_to_ptr.hbm [resolvable:$true] %s359_s21 }
  0x24   : > { %s469_s23 = sshll.u32 %s230_s22, 3  ;;  %vm293_vm3 = vcmp.lt.s32.totalorder %v278_v7, 16  ;;  %240 = vst.msk [vmem:[#allocation3] sm:$0xff] %vm238_vm1, %v675_v13  ;;  %v331_v35 = vadd.s32 %v330_v33, %v329_v32  ;;  %s357_s19 = sshll.u32 %s224_s18, 4  ;;  %s358_s19 = int_to_ptr.vmem [resolvable:$true] %s357_s19 }
  0x25   : > { %s232_s30 = scalar_lea.vmem %s838_s2, %s469_s23  ;;  %s347_s23 = scalar_lea.sflag [#allocation7], %s770_s11 }
  0x26   : > { %v281_v2 = vld [vmem:[%s232_s30] sm:$0xff]  ;;  %270 = vmatpush.bf16.msra.mxu0 %v482_v3  ;;  %vm332_vm4 = vcmp.lt.s32.totalorder %v331_v35, 16  ;;  %s603_s28 = sshra.s32 %s360_s21, 4  ;;  %s609_s15 = scalar_lea.hbm %s839_s3, 2  ;;  %s604_s28 = int_to_ptr.hbm [resolvable:$true] %s603_s28 }
  0x27   : > { %284 = vperm.xlu1 %552, %v281_v2   ;;  %s605_s29 = scalar_lea.hbm %s604_s28, 1  ;;  %p610_p8 = scmp.lt.s32.totalorder %s604_s28, %s839_s3 }
  0x28   : > { %p606_p5 = scmp.ne.s32.totalorder %s604_s28, %s605_s29  ;;  %p611_p10 = scmp.lt.s32.totalorder %s609_s15, %s605_s29 }
  0x29   : > { %478 = vmatmul.msk.bf16.vlgmr.msra.gmra.mxu0 %vm259_vm0, %v242_v4  ;;  %v295_v14 = vld [vmem:[#allocation2] sm:$0xff] }
  0x2a   : > { %v282_v15 = vld [vmem:[#allocation4] sm:$0xff]  ;;  %p607_p6 = pnand %p606_p5, %p747_p9  ;;  %p612_p13 = por %p611_p10, %p610_p8 }
  0x2b   : > { %v302_v27 = vld [vmem:[#allocation3] sm:$0xff] }
  0x2c   : > { %p608_p7 = pneg %p607_p6 }
  0x2e   : > { %p613_p0 = pnand %p612_p13, %p608_p7 }
  0x99   : > { %v285_v8 = vpop.permute.xlu1 %284 }
  0x9a   : > { %vm286_vm2 = vcmp.eq.s32.totalorder %v278_v7, %v285_v8 }
  0xa6   : > { %v272_v9 = vpop.f32.mrf.mxu0 }
  0xa7   : > { %v294_v10 = vsel %vm293_vm3, %v272_v9, -1e+30  ;;  %v287_v11 = vsel %vm286_vm2, %v272_v9, 0.0 }
  0xa8   : > { %296 = vmax.xlane.f32.xlu0 %v294_v10  ;;  %288 = vadd.xlane.f32.xlu2 %v287_v11 }
  0xae   : > { %v274_v12 = vpop.f32.mrf.mxu0 }
 0x11b   : > { %v297_v16 = vpop.xlane.xlu0 %296  ;;  %v289_v17 = vpop.xlane.xlu2 %288 }
 0x11c   : > { %v298_v18 = vmax.f32 %v295_v14, %v297_v16  ;;  %v290_v19 = vadd.f32 %v289_v17, %v282_v15 }
 0x11e   : > { %v299_v20 = vsub.f32 %v295_v14, %v298_v18  ;;  %316 = vst.msk [vmem:[#allocation2] sm:$0xff] %vm238_vm1, %v298_v18  ;;  %306 = vperm.xlu0 %551, %v298_v18  }
 0x11f   : > { %292 = vst.msk [vmem:[#allocation4] sm:$0xff] %vm238_vm1, %v290_v19 }
 0x120   : > { %v300_v25 = vmul.f32 1.442695, %v299_v20 }
 0x125   : > { %v320_v37 = vld [vmem:[#allocation2] sm:$0xff] }
 0x126   : > { %v325_v39 = vld [vmem:[#allocation4] sm:$0xff] }
 0x190   : > { %v307_v21 = vpop.permute.xlu0 %306 }
 0x191   : > { %v309_v22 = vsub.f32 %v294_v10, %v307_v21 }
 0x193   : > { %v310_v23 = vmul.f32 1.442695, %v309_v22 }
 0x195   : > { %553 = vpow2.f32 %v310_v23 }
 0x196   : > { %555 = vpow2.f32 %v300_v25 }
 0x19b   : > { %v554_v24 = vpop.eup %553 }
 0x19c   : > { %312 = vadd.xlane.f32.xlu1 %v554_v24  ;;  %v556_v26 = vpop.eup %555 }
 0x19d   : > { %v303_v28 = vmul.f32 %v556_v26, %v302_v27 }
 0x20f   : > { %v313_v29 = vpop.xlane.xlu1 %312 }
 0x210   : > { %v314_v30 = vadd.f32 %v313_v29, %v303_v28 }
 0x212   : > { %315 = vst.msk [vmem:[#allocation3] sm:$0xff] %vm238_vm1, %v314_v30 }
 0x219   : > { %v321_v31 = vld [vmem:[#allocation3] sm:$0xff] }
 0x21a   : > { %557 = vlog2.f32 %v321_v31 }
 0x220   : > { %v558_v34 = vpop.eup %557 }
 0x221   : > { %v323_v36 = vmul.f32 0.6931472, %v558_v34 }
 0x223   : > { %v324_v38 = vadd.f32 %v323_v36, %v320_v37 }
 0x225   : > { %v326_v40 = vsub.f32 %v324_v38, %v325_v39 }
 0x227   : > { %v333_v41 = vsel %vm332_vm4, %v326_v40, 0.0 }
 0x228   : > { %v334_v42 = vsel %vm238_vm1, %v333_v41, 0.0 }
 0x229   : > { %335 = vadd.xlane.f32.xlu2 %v334_v42 }
 0x29c   : > { %v336_v43 = vpop.xlane.xlu2 %335 }
 0x29d   : > { %v337_v44 = vrot.slane %v336_v43, 4 }
 0x29f   : > { %v338_v45 = vadd.f32 %v337_v44, %v336_v43 }
 0x2a1   : > { %v339_v46 = vrot.slane %v338_v45, 2 }
 0x2a3   : > { %v340_v47 = vadd.f32 %v339_v46, %v338_v45 }
 0x2a5   : > { %v341_v48 = vrot.slane %v340_v47, 1 }
 0x2a7   : > { %v342_v49 = vadd.f32 %v341_v48, %v340_v47 }
 0x2a9   : > { %484 = vpush %v342_v49 }
 0x2da   : > { %s485_s22 = spop %484 }
 0x2db   : > { %v344_v50 = vstv %s485_s22 }
 0x2dc   : > { %345 = vst [vmem:[%s224_s18] sm:$0x1] %v344_v50 }
 0x2dd   : > { %616 = shalt.err (!%p613_p0)
}
 0x2de   : > { %488 = dma.vmem_to_hbm [thread:$0]  (%p747_p9), %s358_s19, 16, %s360_s21, %s347_s23  }
 0x2df PF: > { %s371_s11 = sand.u32 1, %s651_s12   ;;  %p495_p1 = pnand %p464_p12, %p754_p11 }
 0x2e0   : > { %s372_s6 = scalar_lea.sflag [#allocation7], %s371_s11 }
 0x2e1   : > { %p496_p2 = pneg %p495_p1 }
 0x2e3   : > { %646 = dma.done.wait (%p496_p2), %s372_s6, 16  }
 0x2e4   : > { %648 = vsyncadd (%p496_p2), %s372_s6, 4294967280  ;;  %s19_s17 = sadd.s32 1, %s671_s17   ;;  %s844_s12 = smov %s655_s13 }
 0x2e5   : > { %p16_p3 = scmp.ge.s32.totalorder %s19_s17, 4   ;;  %s845_s13 = smov %s659_s14 }
 0x2e6   : > { %s846_s14 = smov %s752_s26  ;;  %s847_s15 = smov %s667_s16 }
 0x2e7   : > { %s848_s16 = smov %s850_s20  ;;  %18 = sbr.rel (!%p16_p3) target bundleno = 6 (0x6), region = 91 }
 0x2ec   :  { %377 = vsyncpa [#allocation6], 1 }
 0x2ed   :  { %379 = vsyncpa [#allocation6 + $0x1], 1 }
 0x2ee   :  { %380 = vsyncpa [#allocation7], 1 }
 0x2ef   :  { %382 = vsyncpa [#allocation7 + $0x1], 1 }

</bundles_post_ra>
